<compile_context>
chip_gen: v7x
topology: tpu7x:2x2x1
jax: 0.10.0
libtpu: 0.0.40
codegen_flags: <defaults>
</compile_context>

<pallas_src>
import functools

import jax
import jax.numpy as jnp
from jax.experimental import pallas as pl
from jax.experimental.pallas import tpu as pltpu


def _round_up(x, m):
    return (x + m - 1) // m * m


def _cdiv(a, b):
    return (a + b - 1) // b


def _sublane(dtype):
    return {4: 8, 2: 16, 1: 32}[jnp.dtype(dtype).itemsize]


def _chip_config():
    """Returns (default_tile_t, block_i_granule, default_block_i, vmem_bytes, megacore)."""
    kind = ""
    try:
        kind = jax.devices()[0].device_kind.lower()
    except Exception:
        pass
    vmem = None
    try:
        vmem = int(pltpu.get_tpu_info().vmem_capacity_bytes)
    except Exception:
        vmem = None
    if "v7" in kind:
        # 64 MiB VMEM per TC, 2 TCs: smaller tiles, keep the parallel axis >= 2.
        return 512, 256, 256, (vmem or (64 << 20)), True
    if "v6" in kind:
        # Roofline knee ~650 FLOP/byte -> tile_t ~1024; 128 MiB VMEM has room.
        return 1024, 256, 512, (vmem or (128 << 20)), False
    if "v5" in kind:
        # Knee ~240 FLOP/byte -> tile_t ~384 is enough; 4x128x128 MXU is fine
        # with 128-granule contraction.
        return 384, 128, 512, (vmem or (128 << 20)), False
    # Unknown part: conservative (fits a 64 MiB VMEM).
    return 512, 128, 256, (vmem or (64 << 20)), False


def _llama_mlp_kernel(x_ref, wgu_ref, wd_ref, o_ref, acc_ref, *, block_i):
    k = pl.program_id(1)

    @pl.when(k == 0)
    def _():
        acc_ref[...] = jnp.zeros_like(acc_ref)

    x = x_ref[...]
    # Fused gate+up projection: one contiguous weight DMA + one MXU pass/step.
    gu = jnp.dot(x, wgu_ref[...], preferred_element_type=jnp.float32)
    g = gu[:, :block_i]
    u = gu[:, block_i:]
    # SiLU + gating runs on VPU/EUP slots (free filler next to MXU/DMA work).
    h = (g * jax.nn.sigmoid(g)) * u
    # Downcast to weight dtype so bf16 weights run the MXU at bf16 peak.
    acc_ref[...] += jnp.dot(h.astype(wd_ref.dtype), wd_ref[...],
                            preferred_element_type=jnp.float32)

    @pl.when(k == pl.num_programs(1) - 1)
    def _():
        o_ref[...] = acc_ref[...].astype(o_ref.dtype)


def prepare_llama_mlp_weights(wg_t, wu_t, wd_t, *, block_i=None):
    """One-time weight packing (do at load time, NOT per forward call).

    wg_t / wu_t: [H, I]  (gate/up nn.Linear weights, transposed)
    wd_t:        [I, H]  (down nn.Linear weight, transposed)

    Returns (wgu, wd_p, block_i):
      wgu : [num_i, H, 2*block_i]  chunk-major fused [gate_k | up_k] slabs
            (each grid step DMAs one contiguous slab at full HBM bandwidth)
      wd_p: [I_pad, H]             zero-padded down-proj weight
    """
    H, I = wg_t.shape
    _, gran, default_bi, _, _ = _chip_config()
    if block_i is None:
        block_i = default_bi
    block_i = max(gran, min(_round_up(block_i, gran), _round_up(I, gran)))
    I_pad = _round_up(I, block_i)
    num_i = I_pad // block_i
    pad_i = I_pad - I

    # Zero padding along I is mathematically inert for SwiGLU.
    wg_p = jnp.pad(wg_t, ((0, 0), (0, pad_i))) if pad_i else wg_t
    wu_p = jnp.pad(wu_t, ((0, 0), (0, pad_i))) if pad_i else wu_t
    wd_p = jnp.pad(wd_t, ((0, pad_i), (0, 0))) if pad_i else wd_t

    wgu = jnp.concatenate(
        [wg_p.reshape(H, num_i, block_i).transpose(1, 0, 2),
         wu_p.reshape(H, num_i, block_i).transpose(1, 0, 2)],
        axis=2)  # [num_i, H, 2*block_i]
    return wgu, wd_p, block_i


@functools.partial(jax.jit, static_argnames=("tile_t",))
def llama_mlp_fused(x, wgu, wd_p, *, tile_t=None):
    """SwiGLU MLP forward with pre-packed weights (prepare_llama_mlp_weights)."""
    B, S, H = x.shape
    num_i, Hw, two_bi = wgu.shape
    assert Hw == H, "fused weight hidden dim mismatch"
    block_i = two_bi // 2
    I_pad = num_i * block_i
    T = B * S
    sub = _sublane(x.dtype)

    default_tile_t, _, _, vmem_cap, megacore = _chip_config()
    if tile_t is None:
        tile_t = default_tile_t
    tile_t = max(sub, min(_round_up(tile_t, sub), _round_up(T, sub)))
    # Megacore (v7x): make sure the parallel token axis has >= 2 tiles so the
    # second TensorCore is not idle, whenever T is large enough to split.
    if megacore and tile_t >= T and T >= 2 * sub:
        tile_t = _round_up(_cdiv(T, 2), sub)

    bx = jnp.dtype(x.dtype).itemsize
    bw = jnp.dtype(wgu.dtype).itemsize

    def vmem_est(tt):
        return int(1.15 * (
            2 * tt * H * bx                 # x tile (double-buffered)
            + 2 * tt * H * bx               # out tile (double-buffered)
            + tt * H * 4                    # f32 accumulator scratch
            + 2 * H * 2 * block_i * bw      # fused [Wg|Wu] chunk (double-buffered)
            + 2 * block_i * H * bw          # Wd chunk (double-buffered)
            + tt * 2 * block_i * 4          # f32 gu intermediate
            + 3 * tt * block_i * 4          # sigmoid / gated / downcast temps
        )) + (2 << 20)

    budget = int(0.9 * vmem_cap)            # generation-aware VMEM cap
    while vmem_est(tile_t) > budget and tile_t > sub:
        tile_t = max(sub, _round_up(tile_t // 2, sub))
    vmem_limit = min(max(vmem_est(tile_t), 32 << 20), budget)

    T_pad = _round_up(T, tile_t)
    num_t = T_pad // tile_t

    x2d = x.reshape(T, H)
    if T_pad != T:
        x2d = jnp.pad(x2d, ((0, T_pad - T), (0, 0)))   # zero rows: inert, sliced off

    flops = 6 * T_pad * H * I_pad
    bytes_accessed = (num_t * (wgu.size * bw + wd_p.size * jnp.dtype(wd_p.dtype).itemsize)
                      + x2d.size * bx + T_pad * H * bx)

    out2d = pl.pallas_call(
        functools.partial(_llama_mlp_kernel, block_i=block_i),
        out_shape=jax.ShapeDtypeStruct((T_pad, H), x.dtype),
        grid_spec=pltpu.PrefetchScalarGridSpec(
            num_scalar_prefetch=0,
            grid=(num_t, num_i),                                   # reduction axis last
            in_specs=[
                pl.BlockSpec((tile_t, H), lambda t, k: (t, 0)),    # x tile
                pl.BlockSpec((pl.Squeezed(), H, 2 * block_i),      # contiguous [Wg|Wu] slab
                             lambda t, k: (k, 0, 0)),
                pl.BlockSpec((block_i, H), lambda t, k: (k, 0)),   # Wd row-slab (contiguous)
            ],
            out_specs=pl.BlockSpec((tile_t, H), lambda t, k: (t, 0)),
            scratch_shapes=[pltpu.VMEM((tile_t, H), jnp.float32)],
        ),
        compiler_params=pltpu.CompilerParams(
            dimension_semantics=("parallel", "arbitrary"),
            vmem_limit_bytes=vmem_limit,
        ),
        cost_estimate=pl.CostEstimate(
            flops=flops,
            transcendentals=T_pad * I_pad,
            bytes_accessed=bytes_accessed),
    )(x2d, wgu, wd_p)

    return out2d[:T].reshape(B, S, H)


def llama_mlp(x, wg_t, wu_t, wd_t, *, tile_t=None, block_i=None):
    """Convenience wrapper matching the original API.

    NOTE: packs the weights on every call; in real usage call
    prepare_llama_mlp_weights once at weight-load time and use llama_mlp_fused.
    """
    wgu, wd_p, _ = prepare_llama_mlp_weights(wg_t, wu_t, wd_t, block_i=block_i)
    return llama_mlp_fused(x, wgu, wd_p, tile_t=tile_t)


def _reference(x, wg_t, wu_t, wd_t):
    hp = jax.lax.Precision.HIGHEST
    xf = x.astype(jnp.float32)
    g = jnp.dot(xf, wg_t.astype(jnp.float32), precision=hp)
    u = jnp.dot(xf, wu_t.astype(jnp.float32), precision=hp)
    return jnp.dot(jax.nn.silu(g) * u, wd_t.astype(jnp.float32), precision=hp)


if __name__ == "__main__":
    # Small, MLP-consistent shapes; seq/intermediate chosen to exercise both
    # the token-padding and the intermediate-dim padding paths.
    batch, seq = 2, 7
    hidden_size = 128
    intermediate_size = 384

    key = jax.random.PRNGKey(0)
    kx, kg, ku, kd = jax.random.split(key, 4)

    x = jax.random.normal(kx, (batch, seq, hidden_size), dtype=jnp.float32)
    # nn.Linear weight shapes: gate/up [I, H], down [H, I]; stored transposed.
    wg_t = jax.random.normal(kg, (hidden_size, intermediate_size), jnp.float32) * 0.02
    wu_t = jax.random.normal(ku, (hidden_size, intermediate_size), jnp.float32) * 0.02
    wd_t = jax.random.normal(kd, (intermediate_size, hidden_size), jnp.float32) * 0.02

    ref = _reference(x, wg_t, wu_t, wd_t)

    # ---- f32 path: weights packed once (hoisted), multiple t/k grid steps ----
    wgu, wd_p, _ = prepare_llama_mlp_weights(wg_t, wu_t, wd_t, block_i=256)
    out_f32 = jax.block_until_ready(llama_mlp_fused(x, wgu, wd_p, tile_t=8))
    assert out_f32.shape == (batch, seq, hidden_size)
    assert jnp.allclose(out_f32, ref, atol=5e-4, rtol=5e-4), "f32 mismatch vs reference"

    # ---- bf16 path (the performant config), chip-default tiles --------------
    wgu_b, wd_b, _ = prepare_llama_mlp_weights(
        wg_t.astype(jnp.bfloat16), wu_t.astype(jnp.bfloat16),
        wd_t.astype(jnp.bfloat16))
    out_bf16 = jax.block_until_ready(
        llama_mlp_fused(x.astype(jnp.bfloat16), wgu_b, wd_b))
    assert out_bf16.shape == (batch, seq, hidden_size)
    assert jnp.allclose(out_bf16.astype(jnp.float32), ref, atol=3e-2, rtol=3e-2), \
        "bf16 mismatch vs reference"

    # Convenience wrapper path (packs weights in-line) — same result.
    out_w = jax.block_until_ready(llama_mlp(x, wg_t, wu_t, wd_t, tile_t=8, block_i=256))
    assert jnp.allclose(out_w, out_f32, atol=1e-5, rtol=1e-5)

    print("KERNEL_OK")
</pallas_src>

<mosaic_0001>
module attributes {stable_mosaic.version = 11 : i64} {
  func.func @_llama_mlp_kernel(%arg0: i32, %arg1: i32, %arg2: memref<8x128xf32, #tpu.memory_space<vmem>>, %arg3: memref<1x128x512xf32, #tpu.memory_space<vmem>>, %arg4: memref<256x128xf32, #tpu.memory_space<vmem>>, %arg5: memref<8x128xf32, #tpu.memory_space<vmem>>, %arg6: memref<8x128xf32, #tpu.memory_space<vmem>>) attributes {dimension_semantics = [#tpu.dimension_semantics<parallel>, #tpu.dimension_semantics<arbitrary>], iteration_bounds = array<i64: 2, 2>, scalar_prefetch = 0 : i64, scratch_operands = 1 : i64, tpu.core_type = #tpu.core_type<tc>, window_params = [{transform_indices = @transform_0, window_bounds = array<i64: 8, 128>}, {transform_indices = @transform_1, window_bounds = array<i64: 1, 128, 512>}, {transform_indices = @transform_2, window_bounds = array<i64: 256, 128>}, {transform_indices = @transform_3, window_bounds = array<i64: 8, 128>}]} {
    %c0_i32 = arith.constant 0 : i32
    %0 = arith.cmpi eq, %arg1, %c0_i32 : i32
    %1 = arith.extui %0 : i1 to i32
    %c0_i32_0 = arith.constant 0 : i32
    %2 = arith.cmpi ne, %1, %c0_i32_0 : i32
    scf.if %2 {
      %cst_14 = arith.constant 0.000000e+00 : f32
      %24 = vector.broadcast %cst_14 : f32 to vector<8x128xf32>
      %c0_15 = arith.constant 0 : index
      %c0_16 = arith.constant 0 : index
      %25 = vector.load %arg6[%c0_15, %c0_16] : memref<8x128xf32, #tpu.memory_space<vmem>>, vector<8x128xf32>
      tpu.vector_store %arg6[%c0_15, %c0_16], %24 {strides = array<i32>} : memref<8x128xf32, #tpu.memory_space<vmem>>, vector<8x128xf32>,
    } else {
    }
    %c0 = arith.constant 0 : index
    %c0_1 = arith.constant 0 : index
    %3 = vector.load %arg2[%c0, %c0_1] : memref<8x128xf32, #tpu.memory_space<vmem>>, vector<8x128xf32>
    %c0_2 = arith.constant 0 : index
    %c0_3 = arith.constant 0 : index
    %c0_4 = arith.constant 0 : index
    %4 = vector.load %arg3[%c0_2, %c0_3, %c0_4] : memref<1x128x512xf32, #tpu.memory_space<vmem>>, vector<1x128x512xf32>
    %5 = vector.shape_cast %4 : vector<1x128x512xf32> to vector<128x512xf32>
    %cst = arith.constant dense<0.000000e+00> : vector<8x512xf32>
    %6 = tpu.matmul %3, %5, %cst {dimension_numbers = #tpu.dot_dimension_numbers<[1], [0], [0], [1], [0, 0, 1, 1], [], []>} : vector<8x128xf32>, vector<128x512xf32>, vector<8x512xf32> -> vector<8x512xf32>
    %7 = vector.extract_strided_slice %6 {offsets = [0, 0], sizes = [8, 256], strides = [1, 1]} : vector<8x512xf32> to vector<8x256xf32>
    %8 = vector.extract_strided_slice %6 {offsets = [0, 256], sizes = [8, 256], strides = [1, 1]} : vector<8x512xf32> to vector<8x256xf32>
    %9 = arith.negf %7 : vector<8x256xf32>
    %10 = math.exp %9 : vector<8x256xf32>
    %cst_5 = arith.constant 1.000000e+00 : f32
    %11 = vector.broadcast %cst_5 : f32 to vector<8x256xf32>
    %12 = arith.addf %11, %10 : vector<8x256xf32>
    %13 = arith.divf %11, %12 : vector<8x256xf32>
    %14 = arith.mulf %7, %13 : vector<8x256xf32>
    %15 = arith.mulf %14, %8 : vector<8x256xf32>
    %c0_6 = arith.constant 0 : index
    %c0_7 = arith.constant 0 : index
    %16 = vector.load %arg6[%c0_6, %c0_7] : memref<8x128xf32, #tpu.memory_space<vmem>>, vector<8x128xf32>
    %c0_8 = arith.constant 0 : index
    %c0_9 = arith.constant 0 : index
    %17 = vector.load %arg4[%c0_8, %c0_9] : memref<256x128xf32, #tpu.memory_space<vmem>>, vector<256x128xf32>
    %cst_10 = arith.constant dense<0.000000e+00> : vector<8x128xf32>
    %18 = tpu.matmul %15, %17, %cst_10 {dimension_numbers = #tpu.dot_dimension_numbers<[1], [0], [0], [1], [0, 0, 1, 1], [], []>} : vector<8x256xf32>, vector<256x128xf32>, vector<8x128xf32> -> vector<8x128xf32>
    %19 = arith.addf %16, %18 : vector<8x128xf32>
    %c0_11 = arith.constant 0 : index
    %c0_12 = arith.constant 0 : index
    %20 = vector.load %arg6[%c0_11, %c0_12] : memref<8x128xf32, #tpu.memory_space<vmem>>, vector<8x128xf32>
    tpu.vector_store %arg6[%c0_11, %c0_12], %19 {strides = array<i32>} : memref<8x128xf32, #tpu.memory_space<vmem>>, vector<8x128xf32>,
    %c1_i32 = arith.constant 1 : i32
    %21 = arith.cmpi eq, %arg1, %c1_i32 : i32
    %22 = arith.extui %21 : i1 to i32
    %c0_i32_13 = arith.constant 0 : i32
    %23 = arith.cmpi ne, %22, %c0_i32_13 : i32
    scf.if %23 {
      %c0_14 = arith.constant 0 : index
      %c0_15 = arith.constant 0 : index
      %24 = vector.load %arg6[%c0_14, %c0_15] : memref<8x128xf32, #tpu.memory_space<vmem>>, vector<8x128xf32>
      %c0_16 = arith.constant 0 : index
      %c0_17 = arith.constant 0 : index
      %25 = vector.load %arg5[%c0_16, %c0_17] : memref<8x128xf32, #tpu.memory_space<vmem>>, vector<8x128xf32>
      tpu.vector_store %arg5[%c0_16, %c0_17], %24 {strides = array<i32>} : memref<8x128xf32, #tpu.memory_space<vmem>>, vector<8x128xf32>,
    } else {
    }
    return
  }
  func.func @transform_0(%arg0: i32, %arg1: i32) -> (i32, i32) {
    %c0_i32 = arith.constant 0 : i32
    %c0_i32_0 = arith.constant 0 : i32
    return %arg0, %c0_i32 : i32, i32
  }
  func.func @transform_1(%arg0: i32, %arg1: i32) -> (i32, i32, i32) {
    %c0_i32 = arith.constant 0 : i32
    %c0_i32_0 = arith.constant 0 : i32
    %c0_i32_1 = arith.constant 0 : i32
    return %arg1, %c0_i32, %c0_i32_0 : i32, i32, i32
  }
  func.func @transform_2(%arg0: i32, %arg1: i32) -> (i32, i32) {
    %c0_i32 = arith.constant 0 : i32
    %c0_i32_0 = arith.constant 0 : i32
    return %arg1, %c0_i32 : i32, i32
  }
  func.func @transform_3(%arg0: i32, %arg1: i32) -> (i32, i32) {
    %c0_i32 = arith.constant 0 : i32
    %c0_i32_0 = arith.constant 0 : i32
    return %arg0, %c0_i32 : i32, i32
  }
}

</mosaic_0001>

<bundles_post_ra>
// kernel: llama_mlp_fused.1
= control target key start
LH: loop header
LB: loop body
LE: loop exit
PB: predicated region body
PF: predicated region fallthrough
CT: control target
= control target key end

     0   :  { %8 = vsyncpa [#allocation4], 0  ;;  %s1416_s0 = inlined_call_operand.vmem [shape: f32[16,128], index: 0, kind: input, shape index: {}]   ;;  %s1417_s1 = inlined_call_operand.hbm [shape: f32[2,128,512], index: 1, kind: input, shape index: {}]   ;;  %s1418_s2 = inlined_call_operand.hbm [shape: f32[512,128], index: 2, kind: input, shape index: {}]   ;;  %s1419_s3 = inlined_call_operand.vmem [shape: f32[16,128], index: 3, kind: output, shape index: {}]  }
   0x1   :  { %10 = vsyncpa [#allocation4 + $0x1], 0 }
   0x2   :  { %11 = vsyncpa [#allocation6], 0 }
   0x3   :  { %13 = vsyncpa [#allocation6 + $0x1], 0  ;;  %s1113_s12 = smov 0   ;;  %s1115_s13 = smov 0  }
   0x4   :  { %s1117_s14 = smov 0   ;;  %s1119_s15 = smov 0  }
   0x5   :  { %s1121_s16 = smov 0   ;;  %s1123_s17 = smov 0  }
   0x6   :  { %s1125_s18 = smov 0   ;;  %s1127_s19 = smov 0  }
   0x7 LB: > { %s709_s20 = sadd.s32 4294967295, %s1083_s19   ;;  %s28_s21 = sadd.s32 1, %s1075_s17  ;;  %s1083_s19 = sphi %s1127_s19, %s19_s19   ;;  %s1079_s18 = sphi %s1125_s18, %s1432_s18   ;;  %s1075_s17 = sphi %s1123_s17, %s1431_s17   ;;  %s1071_s16 = sphi %s1121_s16, %s1430_s16   ;;  %s1067_s15 = sphi %s1119_s15, %s1429_s15   ;;  %s1063_s14 = sphi %s1117_s14, %s1428_s14   ;;  %s1059_s13 = sphi %s1115_s13, %s1427_s13   ;;  %s1055_s12 = sphi %s1113_s12, %s1426_s12  }
   0x8   : > { %p29_p0 = scmp.ge.s32.totalorder %s28_s21, 2  ;;  %s31_s22 = sadd.s32 1, %s1079_s18 }
   0x9   : > { %s64_s23 = sadd.s32 1, %s1063_s14  ;;  %p71_p1 = scmp.ne.s32.totalorder %s1063_s14, %s1059_s13 }
   0xa   : > { %s1434_s21 = smov (%p29_p0, %s28_s21), 0  ;;  %s1436_s22 = smov (!%p29_p0, %s31_s22), %s1079_s18 }
   0xb   : > { %s61_s24 = ssub.s32 %s1075_s17, %s1434_s21  ;;  %p72_p2 = scmp.eq.s32.totalorder %s1083_s19, 0 }
   0xc   : > { %p33_p3 = scmp.ge.s32.totalorder %s1436_s22, 2  ;;  %p62_p4 = scmp.eq.s32.totalorder %s61_s24, 0 }
   0xd   : > { %p1163_p5 = por %p72_p2, %p71_p1  ;;  %p77_p6 = scmp.ne.s32.totalorder %s1059_s13, %s1055_s12 }
   0xe   : > { %s1438_s22 = smov (%p33_p3, %s1436_s22), 0  ;;  %p78_p7 = scmp.eq.s32.totalorder %s709_s20, 0 }
   0xf   : > { %s1171_s26 = scalar_select %p62_p4, %s1063_s14, %s64_s23  }
  0x10   : > { %p874_p8 = scmp.lt.s32.totalorder %s1083_s19, 4  ;;  %s1175_s27 = sand.u32 1, %s1063_s14  }
  0x11   : > { %p1177_p9 = por %p78_p7, %p77_p6  ;;  %s713_s29 = sshll.u32 %s1175_s27, 9 }
  0x12   : > { %s730_s30 = sshll.u32 %s1075_s17, 13  ;;  %s164_s7 = scalar_lea.vmem [#allocation3], %s713_s29 }
  0x13   : > { %s1422_s28 = scalar_select %p1177_p9, 1, 0 }
  0x14   : > { %s1186_s6 = scalar_lea.hbm %s1417_s1, %s730_s30  ;;  %s171_s8 = sshll.u32 %s164_s7, 4  ;;  %s1194_s8 = int_to_ptr.vmem [resolvable:$true] %s171_s8 }
  0x15   : > { %p1190_p10 = pnand %p874_p8, %p1163_p5  ;;  %s161_s10 = scalar_lea.sflag [#allocation4], %s1175_s27 }
  0x16   : > { %s953_s11 = scalar_lea.hbm %s1186_s6, 8192  ;;  %s958_s23 = scalar_lea.hbm %s1417_s1, 16384 }
  0x17   : > { %p954_p11 = scmp.ne.s32.totalorder %s1186_s6, %s953_s11  ;;  %p955_p12 = pneg %p1190_p10 }
  0x18   : > { %p959_p1 = scmp.lt.u32.totalorder %s1186_s6, %s1417_s1  ;;  %p960_p2 = scmp.lt.u32.totalorder %s958_s23, %s953_s11 }
  0x19   : > { %p956_p13 = pnand %p955_p12, %p954_p11  ;;  %p962_p4 = scmp.lt.u32.totalorder %s953_s11, %s1186_s6 }
  0x1a   : > { %p961_p3 = por %p960_p2, %p959_p1 }
  0x1b   : > { %p957_p0 = pneg %p956_p13 }
  0x1c   : > { %p963_p5 = por %p962_p4, %p961_p3 }
  0x1e   : > { %p964_p6 = pnand %p963_p5, %p957_p0 }
  0x20   : > { %967 = shalt.err (!%p964_p6)
}
  0x21   : > { %s968_s29 = scalar_lea.vmem %s1194_s8, 8192  ;;  %s1085_s30 = smov [#allocation3]  }
  0x22   : > { %p969_p7 = scmp.ne.s32.totalorder %s1194_s8, %s968_s29  ;;  %s973_s4 = sshll.u32 %s1085_s30, 4  ;;  %s974_s4 = int_to_ptr.vmem [resolvable:$false] %s973_s4 }
  0x23   : > { %s975_s5 = scalar_lea.vmem %s974_s4, 16384  ;;  %p976_p13 = scmp.lt.s32.totalorder %s1194_s8, %s974_s4 }
  0x24   : > { %p971_p8 = pnand %p969_p7, %p955_p12  ;;  %p977_p1 = scmp.lt.s32.totalorder %s975_s5, %s968_s29 }
  0x26   : > { %p972_p11 = pneg %p971_p8  ;;  %p978_p2 = por %p977_p1, %p976_p13 }
  0x28   : > { %p979_p3 = pnand %p978_p2, %p972_p11 }
  0x2a   : > { %982 = shalt.err (!%p979_p3)
}
  0x2b   : > { %s1086_s7 = smov 512   ;;  %s1087_s11 = smov 32  }
  0x2c   : > { %870 = dma.hbm_to_vmem [thread:$0]  (!%p1190_p10), %s1186_s6, 8192, %s1194_s8, %s161_s10, %s1086_s7, %s1086_s7, %s1087_s11  }
  0x2d   : > { %p719_p0 = scmp.ge.s32.totalorder %s1083_s19, 1  ;;  %p200_p4 = scmp.lt.s32.totalorder %s1083_s19, 5 }
  0x2e   : > { %s716_s12 = sshll.u32 %s1175_s27, 8  ;;  %s731_s23 = sshll.u32 %s1075_s17, 12 }
  0x2f   : > { %p1227_p5 = pnand %p719_p0, %p200_p4  ;;  %s185_s24 = scalar_lea.vmem [#allocation5], %s716_s12 }
  0x30   : > { %s192_s25 = sshll.u32 %s185_s24, 4  ;;  %s1235_s4 = scalar_lea.hbm %s1418_s2, %s731_s23  ;;  %s1237_s25 = int_to_ptr.vmem [resolvable:$true] %s192_s25 }
  0x31   : > { %s182_s6 = scalar_lea.sflag [#allocation6], %s1175_s27  ;;  %s983_s8 = scalar_lea.hbm %s1235_s4, 4096 }
  0x32   : > { %p984_p6 = scmp.ne.s32.totalorder %s1235_s4, %s983_s8  ;;  %s988_s7 = scalar_lea.hbm %s1418_s2, 8192 }
  0x33   : > { %p989_p11 = scmp.lt.u32.totalorder %s1235_s4, %s1418_s2  ;;  %p990_p13 = scmp.lt.u32.totalorder %s988_s7, %s983_s8 }
  0x34   : > { %p986_p7 = pnand %p984_p6, %p955_p12  ;;  %p992_p2 = scmp.lt.u32.totalorder %s983_s8, %s1235_s4 }
  0x35   : > { %p991_p1 = por %p990_p13, %p989_p11 }
  0x36   : > { %p987_p8 = pneg %p986_p7 }
  0x37   : > { %p993_p3 = por %p992_p2, %p991_p1 }
  0x39   : > { %p994_p0 = pnand %p993_p3, %p987_p8 }
  0x3b   : > { %997 = shalt.err (!%p994_p0)
}
  0x3c   : > { %s998_s23 = scalar_lea.vmem %s1237_s25, 4096  ;;  %s1088_s24 = smov [#allocation5]  }
  0x3d   : > { %p999_p4 = scmp.ne.s32.totalorder %s1237_s25, %s998_s23  ;;  %s1003_s29 = sshll.u32 %s1088_s24, 4  ;;  %s1004_s29 = int_to_ptr.vmem [resolvable:$false] %s1003_s29 }
  0x3e   : > { %s1005_s30 = scalar_lea.vmem %s1004_s29, 8192  ;;  %p1006_p9 = scmp.lt.s32.totalorder %s1237_s25, %s1004_s29 }
  0x3f   : > { %p1001_p6 = pnand %p999_p4, %p955_p12  ;;  %p1007_p11 = scmp.lt.s32.totalorder %s1005_s30, %s998_s23 }
  0x41   : > { %p1002_p7 = pneg %p1001_p6  ;;  %p1008_p13 = por %p1007_p11, %p1006_p9 }
  0x43   : > { %p1009_p1 = pnand %p1008_p13, %p1002_p7 }
  0x45   : > { %1012 = shalt.err (!%p1009_p1)
}
  0x46   : > { %s1089_s8 = smov 128   ;;  %s1090_s10 = smov 8  }
  0x47   : > { %873 = dma.hbm_to_vmem [thread:$0]  (!%p1190_p10), %s1235_s4, 4096, %s1237_s25, %s182_s6, %s1089_s8, %s1089_s8, %s1090_s10  }
  0x48   : > { %204 = sbr.rel (%p1227_p5) target bundleno = 598 (0x256), region = 32  ;;  %s206_s5 = sand.u32 (!%p1227_p5), 1, %s1059_s13  }
  0x49   : > { %s720_s7 = sshll.u32 (!%p1227_p5), %s206_s5, 9  ;;  %s207_s11 = scalar_lea.sflag (!%p1227_p5), [#allocation4], %s206_s5 }
  0x4a   : > { %s1268_s12 = scalar_lea.vmem (!%p1227_p5), [#allocation3], %s720_s7  ;;  %p1425_p9 = scmp.ne.s32.totalorder (!%p1227_p5), %s1422_s28, 0 }
  0x4f   : > { %1046 = dma.done.wait (%p1425_p9), %s207_s11, 8192  }
  0x50   : > { %1048 = vsyncadd (%p1425_p9), %s207_s11, 4294959104  ;;  %s721_s23 = sshll.u32 %s206_s5, 8  ;;  %s216_s9 = scalar_lea.sflag [#allocation6], %s206_s5 }
  0x51   : > { %s1274_s27 = scalar_lea.vmem [#allocation5], %s721_s23 }
  0x52   : > { %1050 = dma.done.wait (%p1425_p9), %s216_s9, 4096  }
  0x53   : > { %1052 = vsyncadd (%p1425_p9), %s216_s9, 4294963200  ;;  %p250_p10 = scmp.lt.s32.totalorder %s1071_s16, 1  ;;  %p724_p12 = scmp.ne.s32.totalorder %s1067_s15, 0 }
  0x54   : > { %v1091_v0 = vmov (!%p724_p12), 0.0  }
  0x55   : > { %s1440_s16 = smov (!%p250_p10, %s1071_s16), 1  ;;  %262 = sbr.rel (%p724_p12) target bundleno = 92 (0x5c), region = 44 }
  0x56   : > { %s722_s20 = sshll.u32 %s1440_s16, 3  ;;  %263 = vst [vmem:[#allocation2] sm:$0xff] (!%p724_p12), %v1091_v0 }
  0x57   : > { %s1285_s6 = scalar_lea.vmem %s1416_s0, %s722_s20  ;;  %s1290_s30 = scalar_lea.vmem %s1419_s3, %s722_s20 }
  0x5c PF: > { %v266_v1 = vld [vmem:[%s1268_s12 + $0x8] sm:$0xff]  ;;  %v265_v3 = vld [vmem:[%s1268_s12] sm:$0xff]  ;;  %v1092_v8 = vmov 0.0   ;;  %v268_v25 = vld [vmem:[%s1268_s12 + $0x18] sm:$0xff]  ;;  %p727_p5 = scmp.ne.s32.totalorder %s1067_s15, 1 }
  0x5d   : > { %v270_v2 = vld [vmem:[%s1268_s12 + $0x28] sm:$0xff]  ;;  %v269_v5 = vld [vmem:[%s1268_s12 + $0x20] sm:$0xff]  ;;  %393 = vmatprep.mubr.f32.mxu0 %v1092_v8  ;;  %464 = vmatprep.mubr.f32.mxu1 %v1092_v8  ;;  %v272_v26 = vld [vmem:[%s1268_s12 + $0x38] sm:$0xff] }
  0x5e   : > { %v767_v4 = vpack.c.bf16 %v270_v2, %v266_v1  ;;  %v274_v6 = vld [vmem:[%s1268_s12 + $0x48] sm:$0xff]  ;;  %v769_v9 = vpack.c.bf16 %v269_v5, %v265_v3  ;;  %v273_v11 = vld [vmem:[%s1268_s12 + $0x40] sm:$0xff]  ;;  %v799_v29 = vpack.c.bf16 %v272_v26, %v268_v25  ;;  %v267_v30 = vld [vmem:[%s1268_s12 + $0x10] sm:$0xff] }
  0x5f   : > { %v278_v7 = vld [vmem:[%s1268_s12 + $0x68] sm:$0xff]  ;;  %v277_v12 = vld [vmem:[%s1268_s12 + $0x60] sm:$0xff]  ;;  %v271_v32 = vld [vmem:[%s1268_s12 + $0x30] sm:$0xff] }
  0x60   : > { %v771_v10 = vpack.c.bf16 %v278_v7, %v274_v6  ;;  %v282_v13 = vld [vmem:[%s1268_s12 + $0x88] sm:$0xff]  ;;  %768 = vmatprep.subr.bf16.mxu0 %v767_v4  ;;  %v773_v15 = vpack.c.bf16 %v277_v12, %v273_v11  ;;  %v281_v17 = vld [vmem:[%s1268_s12 + $0x80] sm:$0xff]  ;;  %800 = vmatprep.subr.bf16.mxu1 %v799_v29  ;;  %v801_v35 = vpack.c.bf16 %v271_v32, %v267_v30  ;;  %v276_v36 = vld [vmem:[%s1268_s12 + $0x58] sm:$0xff] }
  0x61   : > { %v286_v14 = vld [vmem:[%s1268_s12 + $0xa8] sm:$0xff]  ;;  %770 = vmatpush1.bf16.msra.mxu0 %v769_v9  ;;  %v285_v18 = vld [vmem:[%s1268_s12 + $0xa0] sm:$0xff]  ;;  %v280_v37 = vld [vmem:[%s1268_s12 + $0x78] sm:$0xff] }
  0x62   : > { %772 = vmatprep.subr.bf16.mxu0 %v771_v10  ;;  %v775_v16 = vpack.c.bf16 %v286_v14, %v282_v13  ;;  %v290_v19 = vld [vmem:[%s1268_s12 + $0xc8] sm:$0xff]  ;;  %v777_v21 = vpack.c.bf16 %v285_v18, %v281_v17  ;;  %v289_v22 = vld [vmem:[%s1268_s12 + $0xc0] sm:$0xff]  ;;  %v803_v39 = vpack.c.bf16 %v280_v37, %v276_v36  ;;  %v275_v40 = vld [vmem:[%s1268_s12 + $0x50] sm:$0xff]  ;;  %802 = vmatpush1.bf16.msra.mxu1 %v801_v35 }
  0x63   : > { %v294_v20 = vld [vmem:[%s1268_s12 + $0xe8] sm:$0xff]  ;;  %v293_v24 = vld [vmem:[%s1268_s12 + $0xe0] sm:$0xff]  ;;  %v279_v41 = vld [vmem:[%s1268_s12 + $0x70] sm:$0xff] }
  0x64   : > { %v779_v23 = vpack.c.bf16 %v294_v20, %v290_v19  ;;  %v298_v27 = vld [vmem:[%s1268_s12 + $0x108] sm:$0xff]  ;;  %v297_v31 = vld [vmem:[%s1268_s12 + $0x100] sm:$0xff]  ;;  %v781_v33 = vpack.c.bf16 %v293_v24, %v289_v22  ;;  %v284_v42 = vld [vmem:[%s1268_s12 + $0x98] sm:$0xff]  ;;  %v805_v45 = vpack.c.bf16 %v279_v41, %v275_v40  ;;  %804 = vmatprep.subr.bf16.mxu1 %v803_v39 }
  0x65   : > { %774 = vmatpush1.bf16.msra.mxu0 %v773_v15  ;;  %v302_v28 = vld [vmem:[%s1268_s12 + $0x128] sm:$0xff]  ;;  %v301_v34 = vld [vmem:[%s1268_s12 + $0x120] sm:$0xff]  ;;  %v288_v46 = vld [vmem:[%s1268_s12 + $0xb8] sm:$0xff] }
  0x66   : > { %776 = vmatprep.subr.bf16.mxu0 %v775_v16  ;;  %v783_v38 = vpack.c.bf16 %v302_v28, %v298_v27  ;;  %v306_v43 = vld [vmem:[%s1268_s12 + $0x148] sm:$0xff]  ;;  %v807_v47 = vpack.c.bf16 %v288_v46, %v284_v42  ;;  %v283_v48 = vld [vmem:[%s1268_s12 + $0x90] sm:$0xff]  ;;  %v785_v50 = vpack.c.bf16 %v301_v34, %v297_v31  ;;  %v292_v51 = vld [vmem:[%s1268_s12 + $0xd8] sm:$0xff]  ;;  %806 = vmatpush1.bf16.msra.mxu1 %v805_v45 }
  0x67   : > { %v310_v44 = vld [vmem:[%s1268_s12 + $0x168] sm:$0xff]  ;;  %v287_v49 = vld [vmem:[%s1268_s12 + $0xb0] sm:$0xff]  ;;  %v296_v52 = vld [vmem:[%s1268_s12 + $0xf8] sm:$0xff] }
  0x68   : > { %v787_v53 = vpack.c.bf16 %v310_v44, %v306_v43  ;;  %v305_v54 = vld [vmem:[%s1268_s12 + $0x140] sm:$0xff]  ;;  %v314_v56 = vld [vmem:[%s1268_s12 + $0x188] sm:$0xff]  ;;  %v809_v58 = vpack.c.bf16 %v287_v49, %v283_v48  ;;  %808 = vmatprep.subr.bf16.mxu1 %v807_v47  ;;  %v811_v59 = vpack.c.bf16 %v296_v52, %v292_v51  ;;  %v291_v60 = vld [vmem:[%s1268_s12 + $0xd0] sm:$0xff] }
  0x69   : > { %778 = vmatpush1.bf16.msra.mxu0 %v777_v21  ;;  %v309_v55 = vld [vmem:[%s1268_s12 + $0x160] sm:$0xff]  ;;  %v318_v57 = vld [vmem:[%s1268_s12 + $0x1a8] sm:$0xff]  ;;  %v295_v61 = vld [vmem:[%s1268_s12 + $0xf0] sm:$0xff] }
  0x6a   : > { %780 = vmatprep.subr.bf16.mxu0 %v779_v23  ;;  %v789_v62 = vpack.c.bf16 %v309_v55, %v305_v54  ;;  %v300_v63 = vld [vmem:[%s1268_s12 + $0x118] sm:$0xff]  ;;  %v791_v1 = vpack.c.bf16 %v318_v57, %v314_v56  ;;  %v313_v2 = vld [vmem:[%s1268_s12 + $0x180] sm:$0xff]  ;;  %v322_v4 = vld [vmem:[%s1268_s12 + $0x1c8] sm:$0xff]  ;;  %810 = vmatpush1.bf16.msra.mxu1 %v809_v58  ;;  %v813_v6 = vpack.c.bf16 %v295_v61, %v291_v60 }
  0x6b   : > { %v304_v0 = vld [vmem:[%s1268_s12 + $0x138] sm:$0xff]  ;;  %v317_v3 = vld [vmem:[%s1268_s12 + $0x1a0] sm:$0xff]  ;;  %v326_v5 = vld [vmem:[%s1268_s12 + $0x1e8] sm:$0xff]  ;;  %812 = vmatprep.subr.bf16.mxu1 %v811_v59 }
  0x6c   : > { %v815_v7 = vpack.c.bf16 %v304_v0, %v300_v63  ;;  %v299_v8 = vld [vmem:[%s1268_s12 + $0x110] sm:$0xff]  ;;  %v793_v10 = vpack.c.bf16 %v317_v3, %v313_v2  ;;  %v308_v11 = vld [vmem:[%s1268_s12 + $0x158] sm:$0xff]  ;;  %v795_v13 = vpack.c.bf16 %v326_v5, %v322_v4  ;;  %v321_v14 = vld [vmem:[%s1268_s12 + $0x1c0] sm:$0xff] }
  0x6d   : > { %782 = vmatpush1.bf16.msra.mxu0 %v781_v33  ;;  %v303_v9 = vld [vmem:[%s1268_s12 + $0x130] sm:$0xff]  ;;  %v312_v12 = vld [vmem:[%s1268_s12 + $0x178] sm:$0xff]  ;;  %v325_v15 = vld [vmem:[%s1268_s12 + $0x1e0] sm:$0xff] }
  0x6e   : > { %784 = vmatprep.subr.bf16.mxu0 %v783_v38  ;;  %814 = vmatpush1.bf16.msra.mxu1 %v813_v6  ;;  %v817_v16 = vpack.c.bf16 %v303_v9, %v299_v8  ;;  %v819_v17 = vpack.c.bf16 %v312_v12, %v308_v11  ;;  %v307_v18 = vld [vmem:[%s1268_s12 + $0x150] sm:$0xff]  ;;  %v797_v20 = vpack.c.bf16 %v325_v15, %v321_v14  ;;  %v316_v21 = vld [vmem:[%s1268_s12 + $0x198] sm:$0xff]  ;;  %v504_v35 = vld [vmem:[%s1274_s27 + $0x80] sm:$0xff] }
  0x6f   : > { %816 = vmatprep.subr.bf16.mxu1 %v815_v7  ;;  %v311_v19 = vld [vmem:[%s1268_s12 + $0x170] sm:$0xff]  ;;  %v320_v22 = vld [vmem:[%s1268_s12 + $0x1b8] sm:$0xff]  ;;  %v505_v36 = vld [vmem:[%s1274_s27 + $0x88] sm:$0xff] }
  0x70   : > { %v821_v23 = vpack.c.bf16 %v311_v19, %v307_v18  ;;  %v823_v24 = vpack.c.bf16 %v320_v22, %v316_v21  ;;  %v315_v25 = vld [vmem:[%s1268_s12 + $0x190] sm:$0xff]  ;;  %v264_v27 = vld [vmem:[%s1285_s6] sm:$0xff]  ;;  %v831_v37 = vpack.c.bf16 %v505_v36, %v504_v35  ;;  %v488_v38 = vld [vmem:[%s1274_s27] sm:$0xff] }
  0x71   : > { %786 = vmatpush1.bf16.msra.mxu0 %v785_v50  ;;  %v319_v26 = vld [vmem:[%s1268_s12 + $0x1b0] sm:$0xff]  ;;  %v324_v28 = vld [vmem:[%s1268_s12 + $0x1d8] sm:$0xff]  ;;  %v489_v39 = vld [vmem:[%s1274_s27 + $0x8] sm:$0xff] }
  0x72   : > { %788 = vmatprep.subr.bf16.mxu0 %v787_v53  ;;  %818 = vmatpush1.bf16.msra.mxu1 %v817_v16  ;;  %v328_v29 = vld [vmem:[%s1268_s12 + $0x1f8] sm:$0xff]  ;;  %v825_v30 = vpack.c.bf16 %v319_v26, %v315_v25  ;;  %v323_v32 = vld [vmem:[%s1268_s12 + $0x1d0] sm:$0xff]  ;;  %v833_v40 = vpack.c.bf16 %v489_v39, %v488_v38  ;;  %v508_v47 = vld [vmem:[%s1274_s27 + $0xa0] sm:$0xff] }
  0x73   : > { %820 = vmatprep.subr.bf16.mxu1 %v819_v17  ;;  %v827_v31 = vpack.c.bf16 %v328_v29, %v324_v28  ;;  %v327_v33 = vld [vmem:[%s1268_s12 + $0x1f0] sm:$0xff]  ;;  %v507_v42 = vld [vmem:[%s1274_s27 + $0x98] sm:$0xff]  ;;  %v509_v48 = vld [vmem:[%s1274_s27 + $0xa8] sm:$0xff] }
  0x74   : > { %v829_v34 = vpack.c.bf16 %v327_v33, %v323_v32  ;;  %v506_v41 = vld [vmem:[%s1274_s27 + $0x90] sm:$0xff]  ;;  %v491_v45 = vld [vmem:[%s1274_s27 + $0x18] sm:$0xff]  ;;  %v839_v49 = vpack.c.bf16 %v509_v48, %v508_v47  ;;  %v492_v50 = vld [vmem:[%s1274_s27 + $0x20] sm:$0xff] }
  0x75   : > { %790 = vmatpush1.bf16.msra.mxu0 %v789_v62  ;;  %v835_v43 = vpack.c.bf16 %v507_v42, %v506_v41  ;;  %v490_v44 = vld [vmem:[%s1274_s27 + $0x10] sm:$0xff]  ;;  %v493_v51 = vld [vmem:[%s1274_s27 + $0x28] sm:$0xff]  ;;  %v511_v54 = vld [vmem:[%s1274_s27 + $0xb8] sm:$0xff] }
  0x76   : > { %792 = vmatprep.subr.bf16.mxu0 %v791_v1  ;;  %822 = vmatpush1.bf16.msra.mxu1 %v821_v23  ;;  %v837_v46 = vpack.c.bf16 %v491_v45, %v490_v44  ;;  %v841_v52 = vpack.c.bf16 %v493_v51, %v492_v50  ;;  %v510_v53 = vld [vmem:[%s1274_s27 + $0xb0] sm:$0xff]  ;;  %v495_v57 = vld [vmem:[%s1274_s27 + $0x38] sm:$0xff]  ;;  %v512_v59 = vld [vmem:[%s1274_s27 + $0xc0] sm:$0xff] }
  0x77   : > { %824 = vmatprep.subr.bf16.mxu1 %v823_v24  ;;  %v843_v55 = vpack.c.bf16 %v511_v54, %v510_v53  ;;  %v494_v56 = vld [vmem:[%s1274_s27 + $0x30] sm:$0xff]  ;;  %v513_v60 = vld [vmem:[%s1274_s27 + $0xc8] sm:$0xff]  ;;  %v496_v62 = vld [vmem:[%s1274_s27 + $0x40] sm:$0xff] }
  0x78   : > { %v845_v58 = vpack.c.bf16 %v495_v57, %v494_v56  ;;  %v847_v61 = vpack.c.bf16 %v513_v60, %v512_v59  ;;  %v497_v63 = vld [vmem:[%s1274_s27 + $0x48] sm:$0xff]  ;;  %v514_v1 = vld [vmem:[%s1274_s27 + $0xd0] sm:$0xff]  ;;  %v515_v2 = vld [vmem:[%s1274_s27 + $0xd8] sm:$0xff] }
  0x79   : > { %794 = vmatpush1.bf16.msra.mxu0 %v793_v10  ;;  %v849_v0 = vpack.c.bf16 %v497_v63, %v496_v62  ;;  %v851_v3 = vpack.c.bf16 %v515_v2, %v514_v1  ;;  %v498_v4 = vld [vmem:[%s1274_s27 + $0x50] sm:$0xff]  ;;  %v499_v5 = vld [vmem:[%s1274_s27 + $0x58] sm:$0xff]  ;;  %v516_v7 = vld [vmem:[%s1274_s27 + $0xe0] sm:$0xff] }
  0x7a   : > { %796 = vmatprep.subr.bf16.mxu0 %v795_v13  ;;  %826 = vmatpush1.bf16.msra.mxu1 %v825_v30  ;;  %v853_v6 = vpack.c.bf16 %v499_v5, %v498_v4  ;;  %v517_v8 = vld [vmem:[%s1274_s27 + $0xe8] sm:$0xff]  ;;  %v500_v10 = vld [vmem:[%s1274_s27 + $0x60] sm:$0xff]  ;;  %v518_v13 = vld [vmem:[%s1274_s27 + $0xf0] sm:$0xff] }
  0x7b   : > { %828 = vmatprep.subr.bf16.mxu1 %v827_v31  ;;  %v855_v9 = vpack.c.bf16 %v517_v8, %v516_v7  ;;  %v501_v11 = vld [vmem:[%s1274_s27 + $0x68] sm:$0xff]  ;;  %v519_v14 = vld [vmem:[%s1274_s27 + $0xf8] sm:$0xff]  ;;  %v502_v16 = vld [vmem:[%s1274_s27 + $0x70] sm:$0xff] }
  0x7c   : > { %v857_v12 = vpack.c.bf16 %v501_v11, %v500_v10  ;;  %v859_v15 = vpack.c.bf16 %v519_v14, %v518_v13  ;;  %v503_v17 = vld [vmem:[%s1274_s27 + $0x78] sm:$0xff] }
  0x7d   : > { %798 = vmatpush1.bf16.msra.mxu0 %v797_v20  ;;  %v861_v18 = vpack.c.bf16 %v503_v17, %v502_v16  ;;  %v487_v36 = vld [vmem:[#allocation2] sm:$0xff] }
  0x7e   : > { %830 = vmatpush1.bf16.msra.mxu1 %v829_v34  ;;  %832 = vmatprep.subr.bf16.mxu0 %v831_v37 }
  0x80   : > { %394 = vmatmul.mubr.f32.vlgmr.msra.gmra.mrb[0].mxu0 %v264_v27 }
  0x81   : > { %465 = vmatmul.mubr.f32.vlgmr.msra.gmra.mrb[0].mxu1 %v264_v27  ;;  %834 = vmatpush3.bf16.msra.mxu0 %v833_v40 }
  0x82   : > { %836 = vmatprep.subr.bf16.mxu0 %v835_v43 }
  0x85   : > { %838 = vmatpush3.bf16.msra.mxu0 %v837_v46 }
  0x86   : > { %840 = vmatprep.subr.bf16.mxu0 %v839_v49 }
  0x89   : > { %842 = vmatpush3.bf16.msra.mxu0 %v841_v52 }
  0x8a   : > { %844 = vmatprep.subr.bf16.mxu0 %v843_v55 }
  0x8d   : > { %846 = vmatpush3.bf16.msra.mxu0 %v845_v58 }
  0x8e   : > { %848 = vmatprep.subr.bf16.mxu0 %v847_v61 }
  0x91   : > { %850 = vmatpush3.bf16.msra.mxu0 %v849_v0 }
  0x92   : > { %852 = vmatprep.subr.bf16.mxu0 %v851_v3 }
  0x95   : > { %854 = vmatpush3.bf16.msra.mxu0 %v853_v6 }
  0x96   : > { %856 = vmatprep.subr.bf16.mxu0 %v855_v9 }
  0x99   : > { %858 = vmatpush3.bf16.msra.mxu0 %v857_v12 }
  0x9a   : > { %860 = vmatprep.subr.bf16.mxu0 %v859_v15 }
  0x9d   : > { %862 = vmatpush3.bf16.msra.mxu0 %v861_v18 }
 0x153   : > { %v395_v19 = vpop.f32.mrb[0].mxu0 }
 0x154   : > { %v725_v20 = vmul.f32 -1.442695, %v395_v19  ;;  %v397_v21 = vpop.f32.mrb[1].mxu0  ;;  %v466_v23 = vpop.f32.mrb[0].mxu1 }
 0x155   : > { %v726_v22 = vmul.f32 -1.442695, %v397_v21  ;;  %v468_v24 = vpop.f32.mrb[1].mxu1 }
 0x156   : > { %945 = vpow2.f32 %v725_v20 }
 0x157   : > { %947 = vpow2.f32 %v726_v22 }
 0x160   : > { %v946_v25 = vpop.eup %945 }
 0x161   : > { %v948_v26 = vpop.eup %947  ;;  %v477_v27 = vadd.f32 1.0, %v946_v25 }
 0x162   : > { %v478_v28 = vadd.f32 1.0, %v948_v26 }
 0x163   : > { %949 = vrcp.f32 %v477_v27 }
 0x164   : > { %951 = vrcp.f32 %v478_v28 }
 0x16d   : > { %v950_v29 = vpop.eup %949 }
 0x16e   : > { %v952_v30 = vpop.eup %951  ;;  %v483_v31 = vmul.f32 %v950_v29, %v395_v19 }
 0x16f   : > { %v484_v32 = vmul.f32 %v952_v30, %v397_v21 }
 0x170   : > { %v485_v33 = vmul.f32 %v483_v31, %v466_v23 }
 0x171   : > { %v486_v34 = vmul.f32 %v484_v32, %v468_v24 }
 0x173   : > { %584 = vmatprep.mubr.f32.mxu0 %v486_v34 }
 0x174   : > { %585 = vmatmul.mubr.f32.vlgmr.msra.gmra.mrb[2].mxu0 %v485_v33 }
 0x247   : > { %v764_v35 = vpop.f32.mrb[2].mxu0  ;;  %595 = sbr.rel (%p727_p5) target bundleno = 598 (0x256), region = 48 }
 0x248   : > { %v765_v37 = vpop.f32.mrb[3].mxu0 }
 0x249   : > { %v766_v38 = vadd.f32 %v765_v37, %v764_v35 }
 0x24b   : > { %v590_v39 = vadd.f32 %v766_v38, %v487_v36 }
 0x24d   : > { %591 = vst [vmem:[#allocation2] sm:$0xff] %v590_v39 }
 0x254   : > { %v596_v40 = vld [vmem:[#allocation2] sm:$0xff] }
 0x255   : > { %597 = vst [vmem:[%s1290_s30] sm:$0xff] %v596_v40 }
 0x256 PF: > { %s19_s19 = sadd.s32 1, %s1083_s19   ;;  %s1426_s12 = smov %s1059_s13 }
 0x257   : > { %p16_p8 = scmp.ge.s32.totalorder %s19_s19, 6   ;;  %s1427_s13 = smov %s1063_s14 }
 0x258   : > { %s1428_s14 = smov %s1171_s26  ;;  %s1429_s15 = smov %s1075_s17 }
 0x259   : > { %s1430_s16 = smov %s1079_s18  ;;  %s1431_s17 = smov %s1434_s21 }
 0x25a   : > { %s1432_s18 = smov %s1438_s22  ;;  %18 = sbr.rel (!%p16_p8) target bundleno = 7 (0x7), region = 96 }
 0x261   :  { %617 = vsyncpa [#allocation4], 1 }
 0x262   :  { %619 = vsyncpa [#allocation4 + $0x1], 1 }
 0x263   :  { %620 = vsyncpa [#allocation6], 1 }
 0x264   :  { %622 = vsyncpa [#allocation6 + $0x1], 1 }

</bundles_post_ra>
